<compile_context>
chip_gen: v5e
topology: v5e:2x2
jax: 0.10.0
libtpu: 0.0.40
codegen_flags: <defaults>
</compile_context>

<pallas_src>
import functools

import jax
import jax.numpy as jnp
from jax.experimental import pallas as pl
from jax.experimental.pallas import tpu as pltpu

_EPS = 1e-5
_LANE = 128


def _biasfree_ln_kernel(x_ref, w_ref, o_ref, *, inv_c):
    # x_ref: (Bb, C, TN) VMEM tile -- spatial axis on lanes (TN multiple of 128)
    # w_ref: (1, C, 1)   per-channel weight
    # o_ref: (Bb, C, TN)
    x = x_ref[...].astype(jnp.float32)

    # Two-pass statistics over the channel axis (numerically stable; the full C
    # column is resident in VMEM so the extra pass is free at the HBM roofline).
    mu = jnp.sum(x, axis=1, keepdims=True) * inv_c              # (Bb, 1, TN)
    d = x - mu
    var = jnp.sum(d * d, axis=1, keepdims=True) * inv_c         # biased (unbiased=False)
    inv = jax.lax.rsqrt(var + _EPS)                              # (Bb, 1, TN)

    w = w_ref[...].astype(jnp.float32)                           # (1, C, 1)
    # NOTE: BiasFree_LayerNorm does NOT subtract the mean in the output.
    o_ref[...] = (x * inv * w).astype(o_ref.dtype)


def _default_block_bytes():
    # v6e / v7x: ~4 MiB blocks (faster HBM -> amortize the per-step overhead).
    # v5e: 2 MiB already sits at ~88% of its HBM roofline; don't enlarge.
    try:
        kind = jax.devices()[0].device_kind.lower()
    except Exception:
        return 2 * 1024 * 1024
    if "v5 lite" in kind or "v5e" in kind or "v5litepod" in kind:
        return 2 * 1024 * 1024
    return 4 * 1024 * 1024


def _pick_blocks(b, c, n, itemsize, target_bytes):
    """Pick (batch block Bb, lane-dense spatial tile TN)."""
    n128 = pl.cdiv(n, _LANE) * _LANE            # lane-padded spatial extent
    bytes_per_col = max(1, c * itemsize)        # one (C, 1) column

    # Spatial tile: as large as the byte target allows, capped at the full image.
    tn = max(_LANE, (target_bytes // bytes_per_col) // _LANE * _LANE)
    tn = min(tn, n128)

    # If one spatial tile already covers the image, grow the block over batch.
    bb = 1
    if tn >= n128:
        bb = int(min(b, max(1, target_bytes // (bytes_per_col * tn))))

    # Keep >= 4 grid steps when there is enough work so both v7x TensorCores get
    # balanced "parallel" work and prologue/epilogue DMAs overlap.
    def steps(bb_, tn_):
        return pl.cdiv(b, bb_) * pl.cdiv(n, tn_)

    total_units = b * (n128 // _LANE)           # 128-lane columns of available work
    while steps(bb, tn) < 4 and total_units >= 4:
        if bb > 1:
            bb = pl.cdiv(bb, 2)
        elif tn > _LANE:
            tn = max(_LANE, (tn // 2) // _LANE * _LANE)
        else:
            break
    return int(bb), int(tn)


def biasfree_layernorm_nchw(x, weight, *, out_dtype=None, target_block_bytes=None):
    """Bias-free LayerNorm over the channel axis of an NCHW tensor.

    Equivalent to `to_4d(BiasFree_LayerNorm(to_3d(x)), h, w)` from the PyTorch model.
    Stats are accumulated in f32 internally; pass bf16 x and/or out_dtype=bf16 to cut
    HBM traffic on this purely bandwidth-bound op.

    x:      (B, C, H, W)
    weight: (C,)
    """
    B, C, H, W = x.shape
    assert weight.shape == (C,)
    N = H * W
    out_dtype = x.dtype if out_dtype is None else out_dtype
    if target_block_bytes is None:
        target_block_bytes = _default_block_bytes()

    x3 = x.reshape(B, C, N)
    w3 = weight.reshape(1, C, 1)

    itemsize = jnp.dtype(x.dtype).itemsize
    bb, tn = _pick_blocks(B, C, N, itemsize, target_block_bytes)
    grid = (pl.cdiv(B, bb), pl.cdiv(N, tn))

    kernel = functools.partial(_biasfree_ln_kernel, inv_c=1.0 / C)

    # Ragged N / B handled by Pallas partial trailing blocks: padded lanes / batch
    # rows read unspecified data, their computation is lane-local, and their stores
    # are masked. No jnp.pad / output slice -> no extra full-tensor HBM copies.
    out = pl.pallas_call(
        kernel,
        out_shape=jax.ShapeDtypeStruct((B, C, N), out_dtype),
        grid_spec=pltpu.PrefetchScalarGridSpec(
            num_scalar_prefetch=0,
            grid=grid,
            in_specs=[
                pl.BlockSpec((bb, C, tn), lambda b, n: (b, 0, n)),
                pl.BlockSpec((1, C, 1), lambda b, n: (0, 0, 0)),
            ],
            out_specs=pl.BlockSpec((bb, C, tn), lambda b, n: (b, 0, n)),
        ),
        compiler_params=pltpu.CompilerParams(
            dimension_semantics=("parallel", "parallel"),
            vmem_limit_bytes=32 * 1024 * 1024,
        ),
    )(x3, w3)

    return out.reshape(B, C, H, W)


def _reference_nchw(x, weight, out_dtype=None):
    out_dtype = x.dtype if out_dtype is None else out_dtype
    x32 = x.astype(jnp.float32)
    var = jnp.var(x32, axis=1, keepdims=True)  # biased (ddof=0) over channels
    w = weight.reshape(1, -1, 1, 1).astype(jnp.float32)
    return (x32 / jnp.sqrt(var + _EPS) * w).astype(out_dtype)


if __name__ == "__main__":
    k0, k1, k2, k3 = jax.random.split(jax.random.PRNGKey(0), 4)

    # Case 1: typical small NCHW activation (module init: weight = ones(C)).
    # Small spatial extent -> exercises the batch-blocking / >=4-step grid path.
    B, C, H, W = 2, 32, 16, 16
    x = jax.random.normal(k0, (B, C, H, W), dtype=jnp.float32)
    weight = jnp.ones((C,), dtype=jnp.float32)

    out = jax.block_until_ready(biasfree_layernorm_nchw(x, weight))
    ref = _reference_nchw(x, weight)
    assert out.shape == x.shape and out.dtype == x.dtype
    assert jnp.allclose(out, ref, atol=1e-5, rtol=1e-5), "mismatch vs reference (case 1)"

    # Case 2: odd spatial size (exercises the partial-trailing-block / masked-store
    # path with NO pad/slice) and non-trivial weight.
    B2, C2, H2, W2 = 1, 64, 15, 17
    x2 = jax.random.normal(k1, (B2, C2, H2, W2), dtype=jnp.float32)
    w2 = 1.0 + 0.1 * jax.random.normal(k2, (C2,), dtype=jnp.float32)

    out2 = jax.block_until_ready(biasfree_layernorm_nchw(x2, w2))
    ref2 = _reference_nchw(x2, w2)
    assert out2.shape == x2.shape
    assert jnp.allclose(out2, ref2, atol=1e-5, rtol=1e-5), "mismatch vs reference (case 2)"

    # Case 3: bf16 in / bf16 out (halved HBM traffic); stats still f32 inside.
    x3 = jax.random.normal(k3, (2, 48, 16, 16), dtype=jnp.float32).astype(jnp.bfloat16)
    w3 = jnp.ones((48,), dtype=jnp.float32)
    out3 = jax.block_until_ready(
        biasfree_layernorm_nchw(x3, w3, out_dtype=jnp.bfloat16))
    ref3 = _reference_nchw(x3, w3, out_dtype=jnp.bfloat16)
    assert out3.dtype == jnp.bfloat16
    assert jnp.allclose(out3.astype(jnp.float32), ref3.astype(jnp.float32),
                        atol=2e-2, rtol=2e-2), "mismatch vs reference (case 3)"

    print("KERNEL_OK")
</pallas_src>

<mosaic_0001>
module attributes {stable_mosaic.version = 11 : i64} {
  func.func @_biasfree_ln_kernel(%arg0: i32, %arg1: i32, %arg2: memref<1x32x128xf32, #tpu.memory_space<vmem>>, %arg3: memref<1x32x1xf32, #tpu.memory_space<vmem>>, %arg4: memref<1x32x128xf32, #tpu.memory_space<vmem>>) attributes {dimension_semantics = [#tpu.dimension_semantics<parallel>, #tpu.dimension_semantics<parallel>], iteration_bounds = array<i64: 2, 2>, scalar_prefetch = 0 : i64, scratch_operands = 0 : i64, tpu.core_type = #tpu.core_type<tc>, window_params = [{transform_indices = @transform_0, window_bounds = array<i64: 1, 32, 128>}, {pipeline_mode = #tpu.pipeline_mode<synchronous>, transform_indices = @transform_1, window_bounds = array<i64: 1, 32, 1>}, {transform_indices = @transform_2, window_bounds = array<i64: 1, 32, 128>}]} {
    %c0 = arith.constant 0 : index
    %c0_0 = arith.constant 0 : index
    %c0_1 = arith.constant 0 : index
    %0 = vector.load %arg2[%c0, %c0_0, %c0_1] : memref<1x32x128xf32, #tpu.memory_space<vmem>>, vector<1x32x128xf32>
    %cst = arith.constant dense<0.000000e+00> : vector<1x128xf32>
    %1 = vector.multi_reduction <add>, %0, %cst [1] : vector<1x32x128xf32> to vector<1x128xf32>
    %2 = vector.shape_cast %1 : vector<1x128xf32> to vector<1x1x128xf32>
    %cst_2 = arith.constant 3.125000e-02 : f32
    %3 = vector.broadcast %cst_2 : f32 to vector<1x1x128xf32>
    %4 = arith.mulf %2, %3 : vector<1x1x128xf32>
    %5 = vector.broadcast %4 : vector<1x1x128xf32> to vector<1x32x128xf32>
    %6 = arith.subf %0, %5 : vector<1x32x128xf32>
    %7 = arith.mulf %6, %6 : vector<1x32x128xf32>
    %cst_3 = arith.constant dense<0.000000e+00> : vector<1x128xf32>
    %8 = vector.multi_reduction <add>, %7, %cst_3 [1] : vector<1x32x128xf32> to vector<1x128xf32>
    %9 = vector.shape_cast %8 : vector<1x128xf32> to vector<1x1x128xf32>
    %cst_4 = arith.constant 3.125000e-02 : f32
    %10 = vector.broadcast %cst_4 : f32 to vector<1x1x128xf32>
    %11 = arith.mulf %9, %10 : vector<1x1x128xf32>
    %cst_5 = arith.constant 9.99999974E-6 : f32
    %12 = vector.broadcast %cst_5 : f32 to vector<1x1x128xf32>
    %13 = arith.addf %11, %12 : vector<1x1x128xf32>
    %14 = math.rsqrt %13 : vector<1x1x128xf32>
    %c0_6 = arith.constant 0 : index
    %c0_7 = arith.constant 0 : index
    %c0_8 = arith.constant 0 : index
    %15 = vector.load %arg3[%c0_6, %c0_7, %c0_8] : memref<1x32x1xf32, #tpu.memory_space<vmem>>, vector<1x32x1xf32>
    %16 = vector.broadcast %14 : vector<1x1x128xf32> to vector<1x32x128xf32>
    %17 = arith.mulf %0, %16 : vector<1x32x128xf32>
    %18 = vector.broadcast %15 : vector<1x32x1xf32> to vector<1x32x128xf32>
    %19 = arith.mulf %17, %18 : vector<1x32x128xf32>
    %c0_9 = arith.constant 0 : index
    %c0_10 = arith.constant 0 : index
    %c0_11 = arith.constant 0 : index
    %20 = vector.load %arg4[%c0_9, %c0_10, %c0_11] : memref<1x32x128xf32, #tpu.memory_space<vmem>>, vector<1x32x128xf32>
    tpu.vector_store %arg4[%c0_9, %c0_10, %c0_11], %19 {strides = array<i32>} : memref<1x32x128xf32, #tpu.memory_space<vmem>>, vector<1x32x128xf32>,
    return
  }
  func.func @transform_0(%arg0: i32, %arg1: i32) -> (i32, i32, i32) {
    %c0_i32 = arith.constant 0 : i32
    %c0_i32_0 = arith.constant 0 : i32
    return %arg0, %c0_i32, %arg1 : i32, i32, i32
  }
  func.func @transform_1(%arg0: i32, %arg1: i32) -> (i32, i32, i32) {
    %c0_i32 = arith.constant 0 : i32
    %c0_i32_0 = arith.constant 0 : i32
    %c0_i32_1 = arith.constant 0 : i32
    %c0_i32_2 = arith.constant 0 : i32
    return %c0_i32, %c0_i32_0, %c0_i32_1 : i32, i32, i32
  }
  func.func @transform_2(%arg0: i32, %arg1: i32) -> (i32, i32, i32) {
    %c0_i32 = arith.constant 0 : i32
    %c0_i32_0 = arith.constant 0 : i32
    return %arg0, %c0_i32, %arg1 : i32, i32, i32
  }
}

</mosaic_0001>

<bundles_post_ra>
// kernel: tpu_custom_call.1
= control target key start
LH: loop header
LB: loop body
LE: loop exit
PB: predicated region body
PF: predicated region fallthrough
CT: control target
= control target key end

     0   :  { %7 = vsyncpa [#allocation3], 0  ;;  %s779_s0 = inlined_call_operand.hbm [shape: f32[2,32,256], index: 0, kind: input, shape index: {}]   ;;  %s780_s1 = inlined_call_operand.vmem [shape: f32[1,32,1], index: 1, kind: input, shape index: {}]   ;;  %s781_s2 = inlined_call_operand.hbm [shape: f32[2,32,256], index: 2, kind: output, shape index: {}]  }
   0x1   :  { %9 = vsyncpa [#allocation3 + $0x1], 0 }
   0x2   :  { %10 = vsyncpa [#allocation4], 0 }
   0x3   :  { %12 = vsyncpa [#allocation4 + $0x1], 0  ;;  %s621_s9 = smov 0   ;;  %s623_s10 = smov 0  }
   0x4   :  { %s625_s11 = smov 0   ;;  %s627_s12 = smov 0  }
   0x5   :  { %s629_s13 = smov 0   ;;  %s631_s14 = smov 0  }
   0x6   :  { %s633_s15 = smov 0   ;;  %s635_s16 = smov 0  }
   0x7 LB: > { %s365_s17 = sadd.s32 4294967295, %s597_s16   ;;  %s366_s18 = sadd.s32 4294967294, %s597_s16   ;;  %s597_s16 = sphi %s635_s16, %s18_s16   ;;  %s593_s15 = sphi %s633_s15, %s798_s15   ;;  %s589_s14 = sphi %s631_s14, %s797_s14   ;;  %s585_s13 = sphi %s629_s13, %s796_s13   ;;  %s581_s12 = sphi %s627_s12, %s795_s12   ;;  %s577_s11 = sphi %s625_s11, %s794_s11   ;;  %s573_s10 = sphi %s623_s10, %s793_s10   ;;  %s569_s9 = sphi %s621_s9, %s792_s9  }
   0x8   : > { %s27_s19 = sadd.s32 1, %s589_s14  ;;  %s30_s20 = sadd.s32 1, %s593_s15 }
   0x9   : > { %p28_p0 = scmp.ge.s32.totalorder %s27_s19, 2  ;;  %s39_s21 = sadd.s32 1, %s577_s11 }
   0xa   : > { %p46_p1 = scmp.ne.s32.totalorder %s577_s11, %s573_s10  ;;  %p47_p2 = scmp.eq.s32.totalorder %s597_s16, 0 }
   0xb   : > { %s800_s19 = smov (%p28_p0, %s27_s19), 0  ;;  %s802_s20 = smov (!%p28_p0, %s30_s20), %s593_s15 }
   0xc   : > { %784 = sst [smem:[#allocation8_spill]] %s800_s19  ;;  %s35_s22 = ssub.s32 %s589_s14, %s800_s19 }
   0xd   : > { %p674_p3 = por %p47_p2, %p46_p1  ;;  %p32_p4 = scmp.ge.s32.totalorder %s802_s20, 2 }
   0xe   : > { %p52_p5 = scmp.ne.s32.totalorder %s573_s10, %s569_s9  ;;  %p53_p6 = scmp.eq.s32.totalorder %s365_s17, 0 }
   0xf   : > { %p99_p7 = scmp.eq.s32.totalorder %s365_s17, 3  ;;  %s804_s20 = smov (%p32_p4, %s802_s20), 0 }
  0x10   : > { %786 = sst [smem:[#allocation9_spill]] %s804_s20  ;;  %p682_p8 = por %p53_p6, %p52_p5 }
  0x11   : > { %p686_p9 = por %p99_p7, %p46_p1  ;;  %s34_s26 = ssub.s32 %s593_s15, %s804_s20 }
  0x12   : > { %p105_p10 = scmp.eq.s32.totalorder %s366_s18, 3  ;;  %s36_s27 = sor.u32 %s35_s22, %s34_s26 }
  0x13   : > { %p37_p11 = scmp.eq.s32.totalorder %s36_s27, 0  ;;  %p392_p13 = scmp.lt.s32.totalorder %s597_s16, 4 }
  0x14   : > { %p692_p12 = por %p105_p10, %p52_p5  ;;  %s128_s29 = sand.u32 1, %s577_s11  }
  0x15   : > { %s699_s30 = scalar_select %p37_p11, %s577_s11, %s39_s21  }
  0x16   : > { %s369_s3 = sshll.u32 %s128_s29, 5  ;;  %s370_s4 = sshll.u32 %s593_s15, 3 }
  0x17   : > { %s136_s5 = sadd.s32 %s589_s14, %s370_s4  ;;  %s132_s6 = scalar_lea.vmem [#allocation2], %s369_s3 }
  0x18   : > { %s141_s7 = sshll.u32 %s132_s6, 4  ;;  %s371_s8 = sshll.u32 %s136_s5, 3  ;;  %s142_s7 = int_to_ptr.vmem [resolvable:$true] %s141_s7 }
  0x19   : > { %s138_s22 = scalar_lea.hbm %s779_s0, %s371_s8  ;;  %p385_p0 = pnand %p392_p13, %p674_p3 }
  0x1a   : > { %s139_s26 = sshll.u32 %s138_s22, 4  ;;  %s129_s27 = scalar_lea.sflag [#allocation3], %s128_s29  ;;  %s140_s26 = int_to_ptr.hbm [resolvable:$true] %s139_s26 }
  0x1b   : > { %s599_s21 = smov 256   ;;  %s600_s20 = smov 128  }
  0x1c   : > { %s601_s19 = smov 8   ;;  %p372_p1 = scmp.ge.s32.totalorder %s597_s16, 1 }
  0x1d   : > { %387 = dma.hbm_to_vmem [thread:$0]  (!%p385_p0), %s140_s26, 512, %s142_s7, %s129_s27, %s599_s21, %s600_s20, %s601_s19  }
  0x1e   : > { %p149_p2 = scmp.lt.s32.totalorder %s597_s16, 5 }
  0x20   : > { %p150_p4 = pnand %p372_p1, %p149_p2 }
  0x21   : > { %s711_s3 = sand.u32 (!%p150_p4), 1, %s573_s10  }
  0x22   : > { %153 = sbr.rel (%p150_p4) target bundleno = 173 (0xad), region = 28  ;;  %s373_s23 = sshll.u32 (!%p150_p4), %s711_s3, 5 }
  0x23   : > { %s156_s4 = scalar_lea.sflag (!%p150_p4), [#allocation3], %s711_s3  ;;  %s159_s5 = scalar_lea.vmem (!%p150_p4), [#allocation2], %s373_s23 }
  0x27   : > { %560 = dma.done.wait (%p682_p8), %s156_s4, 512  }
  0x28   : > { %562 = vsyncadd (%p682_p8), %s156_s4, 4294966784  ;;  %v602_v0 = vmov 0   ;;  %v226_v1 = vld [vmem:[%s780_s1 + $0x10] sm:$0xff]  ;;  %v224_v2 = vld [vmem:[%s780_s1] sm:$0xff]  ;;  %s376_s18 = sshll.u32 %s585_s13, 3  ;;  %s180_s27 = scalar_lea.vmem [#allocation5], %s373_s23 }
  0x29   : > { %466 = vset.pattern.permute.xlu1 %v602_v0  ;;  %465 = vset.pattern.permute.xlu0 %v602_v0  ;;  %v227_v3 = vld [vmem:[%s780_s1 + $0x18] sm:$0xff]  ;;  %v225_v4 = vld [vmem:[%s780_s1 + $0x8] sm:$0xff]  ;;  %v181_v5 = vld [vmem:[%s159_s5] sm:$0xff]  ;;  %s271_s22 = sadd.s32 %s581_s12, %s376_s18  ;;  %s274_s19 = sshll.u32 %s180_s27, 4  ;;  %s275_s19 = int_to_ptr.vmem [resolvable:$true] %s274_s19 }
  0x2a   : > { %244 = vperm.xlu1 %466, %v226_v1   ;;  %234 = vperm.xlu0 %465, %v224_v2   ;;  %v182_v6 = vld [vmem:[%s159_s5 + $0x8] sm:$0xff]  ;;  %v183_v8 = vld [vmem:[%s159_s5 + $0x10] sm:$0xff]  ;;  %v184_v10 = vld [vmem:[%s159_s5 + $0x18] sm:$0xff]  ;;  %s377_s26 = sshll.u32 %s271_s22, 3  ;;  %s261_s12 = scalar_lea.sflag [#allocation4], %s711_s3 }
  0x2b   : > { %v185_v7 = vadd.f32 %v182_v6, %v181_v5  ;;  %s273_s5 = scalar_lea.hbm %s781_s2, %s377_s26  ;;  %s519_s7 = scalar_lea.hbm %s781_s2, 128 }
  0x2c   : > { %s276_s13 = sshll.u32 %s273_s5, 4  ;;  %s277_s13 = int_to_ptr.hbm [resolvable:$true] %s276_s13 }
  0x2d   : > { %v186_v9 = vadd.f32 %v185_v7, %v183_v8  ;;  %s513_s23 = sshra.s32 %s277_s13, 4  ;;  %s514_s23 = int_to_ptr.hbm [resolvable:$true] %s513_s23 }
  0x2e   : > { %s515_s20 = scalar_lea.hbm %s514_s23, 32  ;;  %p520_p7 = scmp.lt.s32.totalorder %s514_s23, %s781_s2 }
  0x2f   : > { %v187_v11 = vadd.f32 %v186_v9, %v184_v10  ;;  %p516_p3 = scmp.ne.s32.totalorder %s514_s23, %s515_s20  ;;  %p521_p8 = scmp.lt.s32.totalorder %s519_s7, %s515_s20 }
  0x31   : > { %v188_v12 = vrot.slane %v187_v11, 4  ;;  %p517_p5 = pnand %p516_p3, %p686_p9  ;;  %p522_p10 = por %p521_p8, %p520_p7 }
  0x32   : > { %249 = vperm.xlu1 %466, %v227_v3   ;;  %239 = vperm.xlu0 %465, %v225_v4  }
  0x33   : > { %v189_v13 = vadd.f32 %v188_v12, %v187_v11  ;;  %p518_p6 = pneg %p517_p5 }
  0x35   : > { %v190_v14 = vrot.slane %v189_v13, 2  ;;  %p523_p11 = pnand %p522_p10, %p518_p6 }
  0x37   : > { %v191_v15 = vadd.f32 %v190_v14, %v189_v13 }
  0x39   : > { %v192_v16 = vrot.slane %v191_v15, 1 }
  0x3b   : > { %v193_v17 = vadd.f32 %v192_v16, %v191_v15 }
  0x3d   : > { %v194_v18 = vmul.f32 0.03125, %v193_v17 }
  0x3f   : > { %v195_v19 = vsub.f32 %v181_v5, %v194_v18  ;;  %v196_v20 = vsub.f32 %v182_v6, %v194_v18  ;;  %v197_v21 = vsub.f32 %v183_v8, %v194_v18  ;;  %v198_v24 = vsub.f32 %v184_v10, %v194_v18 }
  0x41   : > { %v199_v22 = vmul.f32 %v195_v19, %v195_v19  ;;  %v200_v23 = vmul.f32 %v196_v20, %v196_v20  ;;  %v201_v25 = vmul.f32 %v197_v21, %v197_v21  ;;  %v202_v27 = vmul.f32 %v198_v24, %v198_v24 }
  0x43   : > { %v203_v26 = vadd.f32 %v200_v23, %v199_v22 }
  0x45   : > { %v204_v28 = vadd.f32 %v203_v26, %v201_v25 }
  0x47   : > { %v205_v29 = vadd.f32 %v204_v28, %v202_v27 }
  0x49   : > { %v206_v30 = vrot.slane %v205_v29, 4 }
  0x4b   : > { %v207_v31 = vadd.f32 %v206_v30, %v205_v29 }
  0x4d   : > { %v208_v32 = vrot.slane %v207_v31, 2 }
  0x4f   : > { %v209_v33 = vadd.f32 %v208_v32, %v207_v31 }
  0x51   : > { %v210_v34 = vrot.slane %v209_v33, 1 }
  0x53   : > { %v211_v35 = vadd.f32 %v210_v34, %v209_v33 }
  0x55   : > { %v212_v36 = vmul.f32 0.03125, %v211_v35 }
  0x57   : > { %v213_v37 = vadd.f32 1e-05, %v212_v36 }
  0x59   : > { %467 = vrsqrt.f32 %v213_v37  ;;  %vm220_vm0 = vweird.f32 %v213_v37 }
  0x5f   : > { %v468_v38 = vpop.eup %467 }
  0x60   : > { %v215_v39 = vmul.f32 %v468_v38, %v213_v37  ;;  %vm221_vm1 = vweird.f32 %v468_v38 }
  0x61   : > { %vm222_vm2 = vmor %vm220_vm0, %vm221_vm1 }
  0x62   : > { %v216_v40 = vmul.f32 %v468_v38, %v215_v39 }
  0x64   : > { %v217_v41 = vmul.f32 0.5, %v216_v40 }
  0x66   : > { %v218_v42 = vsub.f32 1.5, %v217_v41 }
  0x68   : > { %v219_v43 = vmul.f32 %v468_v38, %v218_v42 }
  0x6a   : > { %v223_v44 = vsel %vm222_vm2, %v468_v38, %v219_v43 }
  0x6b   : > { %v230_v45 = vmul.f32 %v223_v44, %v183_v8  ;;  %v228_v46 = vmul.f32 %v223_v44, %v181_v5  ;;  %v231_v51 = vmul.f32 %v223_v44, %v184_v10  ;;  %v229_v52 = vmul.f32 %v223_v44, %v182_v6 }
  0x9c   : > { %v245_v47 = vpop.permute.xlu1 %244  ;;  %v235_v48 = vpop.permute.xlu0 %234 }
  0x9d   : > { %v254_v49 = vmul.f32 %v245_v47, %v230_v45  ;;  %v252_v50 = vmul.f32 %v235_v48, %v228_v46 }
  0x9f   : > { %258 = vst [vmem:[%s180_s27 + $0x10] sm:$0xff] %v254_v49 }
  0xa0   : > { %256 = vst [vmem:[%s180_s27] sm:$0xff] %v252_v50 }
  0xa4   : > { %v250_v53 = vpop.permute.xlu1 %249  ;;  %v240_v54 = vpop.permute.xlu0 %239 }
  0xa5   : > { %v255_v55 = vmul.f32 %v250_v53, %v231_v51  ;;  %v253_v56 = vmul.f32 %v240_v54, %v229_v52 }
  0xa7   : > { %259 = vst [vmem:[%s180_s27 + $0x18] sm:$0xff] %v255_v55 }
  0xa8   : > { %257 = vst [vmem:[%s180_s27 + $0x8] sm:$0xff] %v253_v56 }
  0xa9   : > { %526 = shalt.err (!%p523_p11)
}
  0xaa   : > { %s603_s3 = smov 128   ;;  %s604_s24 = smov 256  }
  0xab   : > { %s605_s18 = smov 8  }
  0xac   : > { %382 = dma.vmem_to_hbm [thread:$0]  (%p686_p9), %s275_s19, 512, %s277_s13, %s261_s12, %s603_s3, %s604_s24, %s605_s18  }
  0xad PF: > { %p393_p13 = scmp.ge.s32.totalorder %s597_s16, 2  ;;  %s291_s22 = sand.u32 1, %s569_s9  }
  0xae   : > { %s292_s26 = scalar_lea.sflag [#allocation4], %s291_s22 }
  0xaf   : > { %p389_p0 = pnand %p393_p13, %p692_p12 }
  0xb1   : > { %p390_p1 = pneg %p389_p0 }
  0xb3   : > { %564 = dma.done.wait (%p390_p1), %s292_s26, 512  }
  0xb4   : > { %566 = vsyncadd (%p390_p1), %s292_s26, 4294966784  ;;  %s18_s16 = sadd.s32 1, %s597_s16   ;;  %s790_s25 = sld [smem:[#allocation8_spill]] }
  0xb5   : > { %p15_p2 = scmp.ge.s32.totalorder %s18_s16, 6   ;;  %s791_s27 = sld [smem:[#allocation9_spill]] }
  0xb6   : > { %s792_s9 = smov %s573_s10  ;;  %s793_s10 = smov %s577_s11 }
  0xb7   : > { %s794_s11 = smov %s699_s30  ;;  %s795_s12 = smov %s589_s14 }
  0xb8   : > { %s796_s13 = smov %s593_s15  ;;  %17 = sbr.rel (!%p15_p2) target bundleno = 7 (0x7), region = 73 }
  0xba   : > { %s797_s14 = smov %s790_s25 }
  0xbb   : > { %s798_s15 = smov %s791_s27 }
  0xbd   :  { %298 = vsyncpa [#allocation3], 1 }
  0xbe   :  { %300 = vsyncpa [#allocation3 + $0x1], 1 }
  0xbf   :  { %301 = vsyncpa [#allocation4], 1 }
  0xc0   :  { %303 = vsyncpa [#allocation4 + $0x1], 1 }

</bundles_post_ra>
